<compile_context>
chip_gen: v6e
topology: v6e:2x2x1
jax: 0.10.0
libtpu: 0.0.40
codegen_flags: <defaults>
</compile_context>

<pallas_src>
import functools

import jax
import jax.numpy as jnp
from jax import lax
from jax.experimental import pallas as pl
from jax.experimental.pallas import tpu as pltpu


def _darknet_bottleneck_kernel(
    x_ref,      # (1, Cin, HW)     f32   one batch element, channel-major, HW on lanes
    w1_ref,     # (Ch, Cin)        f32   1x1 conv weight, BN1 scale pre-folded
    b1_ref,     # (Ch, 1)          f32   BN1 bias
    w2_ref,     # (9, Cout, Ch)    f32   3x3 conv weight (tap-major ky*3+kx), BN2 scale folded
    b2_ref,     # (Cout, 1)        f32   BN2 bias
    cmask_ref,  # (2, HW)          f32   column-validity masks: row0 -> ox=-1, row1 -> ox=+1
    o_ref,      # (1, Cout, HW)    f32   output tile (lane-dense store)
    pad_ref,    # VMEM scratch (Ch, HW + 2*W + 2)  flat row-padded conv1 activation
    *,
    H: int,
    W: int,
    add_identity: bool,
):
    HW = H * W
    OFF = W + 1                       # interior starts after one zero row + 1 guard lane
    Ch = w1_ref.shape[0]

    x = x_ref[0]                                            # (Cin, HW)

    # ---- conv1: 1x1 conv == (Ch,Cin)x(Cin,HW) matmul, BN scale folded, + bias + Swish ----
    h = jnp.dot(w1_ref[...], x, preferred_element_type=jnp.float32)   # (Ch, HW)
    h = h + b1_ref[...]
    h = h * jax.nn.sigmoid(h)                               # Swish / SiLU (f32)

    # ---- flat row-padded scratch: zero only the border strips, then write interior ----
    pad_ref[:, 0:OFF] = jnp.zeros((Ch, OFF), jnp.float32)
    pad_ref[:, OFF + HW:OFF + HW + W + 1] = jnp.zeros((Ch, W + 1), jnp.float32)
    pad_ref[:, OFF:OFF + HW] = h

    # column masks (1, HW) — row out-of-bounds is handled by the zero border rows
    cmask = cmask_ref[...]
    mask_for_ox = {-1: cmask[0:1, :], 0: None, 1: cmask[1:2, :]}

    # ---- conv2: 3x3 conv as 9 static lane-offset slices + (Cout,Ch)x(Ch,HW) matmuls ----
    acc = None
    for t in range(9):                                      # static unroll
        oy = t // 3 - 1
        ox = t % 3 - 1
        start = OFF + oy * W + ox                           # static, in [0, 2W+2]
        patch = pad_ref[:, start:start + HW]                # (Ch, HW), no reshape
        m = mask_for_ox[ox]
        if m is not None:
            patch = patch * m                               # zero column wrap-around
        tap = jnp.dot(w2_ref[t], patch, preferred_element_type=jnp.float32)  # (Cout, HW)
        acc = tap if acc is None else acc + tap             # init with first tap

    out = acc + b2_ref[...]
    out = out * jax.nn.sigmoid(out)                         # Swish (f32)

    if add_identity:
        out = out + x                                       # residual in f32

    o_ref[0] = out.astype(o_ref.dtype)


def darknet_bottleneck(x_nchw, params, *, add_identity=True):
    """x_nchw: (N, Cin, H, W) float32 (PyTorch layout). Returns (N, Cout, H, W)."""
    x = x_nchw.astype(jnp.float32)
    N, Cin, H, W = x.shape
    HW = H * W

    w1, s1, b1 = params["w1"], params["s1"], params["b1"]   # (Ch,Cin), (Ch,), (Ch,)
    w2, s2, b2 = params["w2"], params["s2"], params["b2"]   # (Cout,Ch,3,3), (Cout,), (Cout,)
    Ch = w1.shape[0]
    Cout = w2.shape[0]
    add_id = bool(add_identity) and (Cin == Cout)

    # Fold eval-mode BN scale into the conv weights (bias stays a per-channel add).
    w1_f = (w1 * s1[:, None]).astype(jnp.float32)                       # (Ch, Cin)
    b1_f = b1.reshape(Ch, 1).astype(jnp.float32)
    w2_f = (jnp.transpose(w2, (2, 3, 0, 1)).reshape(9, Cout, Ch)
            * s2[None, :, None]).astype(jnp.float32)                    # (9, Cout, Ch)
    b2_f = b2.reshape(Cout, 1).astype(jnp.float32)

    # Column-validity masks for the left/right conv taps (kills row-major wrap-around).
    col = jnp.arange(HW, dtype=jnp.int32) % W
    cmask = jnp.stack([(col >= 1), (col <= W - 2)]).astype(jnp.float32)  # (2, HW)

    # NCHW is already channel-major: flattening spatial is a free reshape (no transpose).
    x_flat = x.reshape(N, Cin, HW)

    kernel = functools.partial(_darknet_bottleneck_kernel,
                               H=H, W=W, add_identity=add_id)

    out_flat = pl.pallas_call(
        kernel,
        out_shape=jax.ShapeDtypeStruct((N, Cout, HW), jnp.float32),
        grid=(N,),                                           # one image per grid step
        in_specs=[
            pl.BlockSpec((1, Cin, HW), lambda b: (b, 0, 0)),
            pl.BlockSpec((Ch, Cin), lambda b: (0, 0)),
            pl.BlockSpec((Ch, 1), lambda b: (0, 0)),
            pl.BlockSpec((9, Cout, Ch), lambda b: (0, 0, 0)),
            pl.BlockSpec((Cout, 1), lambda b: (0, 0)),
            pl.BlockSpec((2, HW), lambda b: (0, 0)),
        ],
        out_specs=pl.BlockSpec((1, Cout, HW), lambda b: (b, 0, 0)),
        scratch_shapes=[pltpu.VMEM((Ch, HW + 2 * W + 2), jnp.float32)],
        compiler_params=pltpu.CompilerParams(
            dimension_semantics=("parallel",)),              # batch across v7x cores
    )(x_flat, w1_f, b1_f, w2_f, b2_f, cmask)

    return out_flat.reshape(N, Cout, H, W)


def init_params(key, in_channels, out_channels, expansion=0.5):
    """Deterministic synthetic weights matching DarknetBottleneck.__init__ shapes."""
    hidden = int(out_channels * expansion)
    eps = 0.001                                              # norm_cfg eps
    k1, k2 = jax.random.split(key)
    # PyTorch conv weight layouts: 1x1 -> (O, I); 3x3 -> (O, I, kH, kW). bias=False (BN).
    w1 = jax.random.normal(k1, (hidden, in_channels), jnp.float32) * 0.1
    w2 = jax.random.normal(k2, (out_channels, hidden, 3, 3), jnp.float32) * 0.1

    def fold_bn(c):
        # constant_init(norm, 1, bias=0); fresh running stats mean=0, var=1 (eval mode)
        gamma = jnp.ones((c,), jnp.float32)
        beta = jnp.zeros((c,), jnp.float32)
        mean = jnp.zeros((c,), jnp.float32)
        var = jnp.ones((c,), jnp.float32)
        scale = gamma / jnp.sqrt(var + eps)
        bias = beta - mean * scale
        return scale, bias

    s1, b1 = fold_bn(hidden)
    s2, b2 = fold_bn(out_channels)
    return dict(w1=w1, s1=s1, b1=b1, w2=w2, s2=s2, b2=b2)


def ref_forward(x_nchw, params, *, add_identity=True):
    """Pure-JAX reference (same math as the PyTorch module) for a correctness check."""
    x = x_nchw.astype(jnp.float32)
    w1 = params["w1"][:, :, None, None]                      # (Ch, Cin, 1, 1)
    h = lax.conv_general_dilated(x, w1, (1, 1), "VALID",
                                 dimension_numbers=("NCHW", "OIHW", "NCHW"))
    h = h * params["s1"][None, :, None, None] + params["b1"][None, :, None, None]
    h = h * jax.nn.sigmoid(h)
    o = lax.conv_general_dilated(h, params["w2"], (1, 1), ((1, 1), (1, 1)),
                                 dimension_numbers=("NCHW", "OIHW", "NCHW"))
    o = o * params["s2"][None, :, None, None] + params["b2"][None, :, None, None]
    o = o * jax.nn.sigmoid(o)
    if add_identity and x.shape[1] == o.shape[1]:
        o = o + x
    return o


if __name__ == "__main__":
    key = jax.random.PRNGKey(0)
    kx, kp = jax.random.split(key)

    N, C, Hs, Ws = 2, 4, 16, 16                 # in_channels == out_channels == 4
    x = jax.random.normal(kx, (N, C, Hs, Ws), jnp.float32)
    params = init_params(kp, in_channels=C, out_channels=C, expansion=0.5)

    out = jax.block_until_ready(darknet_bottleneck(x, params, add_identity=True))
    ref = jax.block_until_ready(ref_forward(x, params, add_identity=True))

    assert out.shape == (N, C, Hs, Ws)
    max_err = float(jnp.max(jnp.abs(out - ref)))
    assert jnp.allclose(out, ref, atol=1e-4, rtol=1e-4), f"max abs err {max_err}"

    print("KERNEL_OK")
</pallas_src>

<mosaic_0001>
module attributes {stable_mosaic.version = 11 : i64} {
  func.func @_darknet_bottleneck_kernel(%arg0: i32, %arg1: memref<1x4x256xf32, #tpu.memory_space<vmem>>, %arg2: memref<2x4xf32, #tpu.memory_space<vmem>>, %arg3: memref<2x1xf32, #tpu.memory_space<vmem>>, %arg4: memref<9x4x2xf32, #tpu.memory_space<vmem>>, %arg5: memref<4x1xf32, #tpu.memory_space<vmem>>, %arg6: memref<2x256xf32, #tpu.memory_space<vmem>>, %arg7: memref<1x4x256xf32, #tpu.memory_space<vmem>>, %arg8: memref<2x290xf32, #tpu.memory_space<vmem>>) attributes {dimension_semantics = [#tpu.dimension_semantics<parallel>], iteration_bounds = array<i64: 2>, scalar_prefetch = 0 : i64, scratch_operands = 1 : i64, tpu.core_type = #tpu.core_type<tc>, window_params = [{transform_indices = @transform_0, window_bounds = array<i64: 1, 4, 256>}, {pipeline_mode = #tpu.pipeline_mode<synchronous>, transform_indices = @transform_1, window_bounds = array<i64: 2, 4>}, {pipeline_mode = #tpu.pipeline_mode<synchronous>, transform_indices = @transform_2, window_bounds = array<i64: 2, 1>}, {pipeline_mode = #tpu.pipeline_mode<synchronous>, transform_indices = @transform_3, window_bounds = array<i64: 9, 4, 2>}, {pipeline_mode = #tpu.pipeline_mode<synchronous>, transform_indices = @transform_4, window_bounds = array<i64: 4, 1>}, {pipeline_mode = #tpu.pipeline_mode<synchronous>, transform_indices = @transform_5, window_bounds = array<i64: 2, 256>}, {transform_indices = @transform_6, window_bounds = array<i64: 1, 4, 256>}]} {
    %c0 = arith.constant 0 : index
    %c0_0 = arith.constant 0 : index
    %c0_1 = arith.constant 0 : index
    %0 = vector.load %arg1[%c0, %c0_0, %c0_1] : memref<1x4x256xf32, #tpu.memory_space<vmem>>, vector<1x4x256xf32>
    %1 = vector.shape_cast %0 : vector<1x4x256xf32> to vector<4x256xf32>
    %c0_2 = arith.constant 0 : index
    %c0_3 = arith.constant 0 : index
    %2 = vector.load %arg2[%c0_2, %c0_3] : memref<2x4xf32, #tpu.memory_space<vmem>>, vector<2x4xf32>
    %cst = arith.constant dense<0.000000e+00> : vector<2x256xf32>
    %3 = tpu.matmul %2, %1, %cst {dimension_numbers = #tpu.dot_dimension_numbers<[1], [0], [0], [1], [0, 0, 1, 1], [], []>} : vector<2x4xf32>, vector<4x256xf32>, vector<2x256xf32> -> vector<2x256xf32>
    %c0_4 = arith.constant 0 : index
    %c0_5 = arith.constant 0 : index
    %4 = vector.load %arg3[%c0_4, %c0_5] : memref<2x1xf32, #tpu.memory_space<vmem>>, vector<2x1xf32>
    %5 = vector.broadcast %4 : vector<2x1xf32> to vector<2x256xf32>
    %6 = arith.addf %3, %5 : vector<2x256xf32>
    %7 = arith.negf %6 : vector<2x256xf32>
    %8 = math.exp %7 : vector<2x256xf32>
    %cst_6 = arith.constant 1.000000e+00 : f32
    %9 = vector.broadcast %cst_6 : f32 to vector<2x256xf32>
    %10 = arith.addf %9, %8 : vector<2x256xf32>
    %11 = arith.divf %9, %10 : vector<2x256xf32>
    %12 = arith.mulf %6, %11 : vector<2x256xf32>
    %cst_7 = arith.constant 0.000000e+00 : f32
    %13 = vector.broadcast %cst_7 : f32 to vector<2x17xf32>
    %c0_8 = arith.constant 0 : index
    %c0_9 = arith.constant 0 : index
    %14 = vector.load %arg8[%c0_8, %c0_9] : memref<2x290xf32, #tpu.memory_space<vmem>>, vector<2x17xf32>
    tpu.vector_store %arg8[%c0_8, %c0_9], %13 {strides = array<i32>} : memref<2x290xf32, #tpu.memory_space<vmem>>, vector<2x17xf32>,
    %cst_10 = arith.constant 0.000000e+00 : f32
    %15 = vector.broadcast %cst_10 : f32 to vector<2x17xf32>
    %c0_11 = arith.constant 0 : index
    %c273 = arith.constant 273 : index
    %16 = vector.load %arg8[%c0_11, %c273] : memref<2x290xf32, #tpu.memory_space<vmem>>, vector<2x17xf32>
    tpu.vector_store %arg8[%c0_11, %c273], %15 {strides = array<i32>} : memref<2x290xf32, #tpu.memory_space<vmem>>, vector<2x17xf32>,
    %c0_12 = arith.constant 0 : index
    %c17 = arith.constant 17 : index
    %17 = vector.load %arg8[%c0_12, %c17] : memref<2x290xf32, #tpu.memory_space<vmem>>, vector<2x256xf32>
    tpu.vector_store %arg8[%c0_12, %c17], %12 {strides = array<i32>} : memref<2x290xf32, #tpu.memory_space<vmem>>, vector<2x256xf32>,
    %c0_13 = arith.constant 0 : index
    %c0_14 = arith.constant 0 : index
    %18 = vector.load %arg6[%c0_13, %c0_14] : memref<2x256xf32, #tpu.memory_space<vmem>>, vector<2x256xf32>
    %19 = vector.extract_strided_slice %18 {offsets = [0, 0], sizes = [1, 256], strides = [1, 1]} : vector<2x256xf32> to vector<1x256xf32>
    %20 = vector.extract_strided_slice %18 {offsets = [1, 0], sizes = [1, 256], strides = [1, 1]} : vector<2x256xf32> to vector<1x256xf32>
    %c0_15 = arith.constant 0 : index
    %c0_16 = arith.constant 0 : index
    %21 = vector.load %arg8[%c0_15, %c0_16] : memref<2x290xf32, #tpu.memory_space<vmem>>, vector<2x256xf32>
    %22 = vector.broadcast %19 : vector<1x256xf32> to vector<2x256xf32>
    %23 = arith.mulf %21, %22 : vector<2x256xf32>
    %c0_17 = arith.constant 0 : index
    %c0_18 = arith.constant 0 : index
    %c0_19 = arith.constant 0 : index
    %24 = vector.load %arg4[%c0_17, %c0_18, %c0_19] : memref<9x4x2xf32, #tpu.memory_space<vmem>>, vector<1x4x2xf32>
    %25 = vector.shape_cast %24 : vector<1x4x2xf32> to vector<4x2xf32>
    %cst_20 = arith.constant dense<0.000000e+00> : vector<4x256xf32>
    %26 = tpu.matmul %25, %23, %cst_20 {dimension_numbers = #tpu.dot_dimension_numbers<[1], [0], [0], [1], [0, 0, 1, 1], [], []>} : vector<4x2xf32>, vector<2x256xf32>, vector<4x256xf32> -> vector<4x256xf32>
    %c0_21 = arith.constant 0 : index
    %c1 = arith.constant 1 : index
    %27 = vector.load %arg8[%c0_21, %c1] : memref<2x290xf32, #tpu.memory_space<vmem>>, vector<2x256xf32>
    %c1_22 = arith.constant 1 : index
    %c0_23 = arith.constant 0 : index
    %c0_24 = arith.constant 0 : index
    %28 = vector.load %arg4[%c1_22, %c0_23, %c0_24] : memref<9x4x2xf32, #tpu.memory_space<vmem>>, vector<1x4x2xf32>
    %29 = vector.shape_cast %28 : vector<1x4x2xf32> to vector<4x2xf32>
    %cst_25 = arith.constant dense<0.000000e+00> : vector<4x256xf32>
    %30 = tpu.matmul %29, %27, %cst_25 {dimension_numbers = #tpu.dot_dimension_numbers<[1], [0], [0], [1], [0, 0, 1, 1], [], []>} : vector<4x2xf32>, vector<2x256xf32>, vector<4x256xf32> -> vector<4x256xf32>
    %31 = arith.addf %26, %30 : vector<4x256xf32>
    %c0_26 = arith.constant 0 : index
    %c2 = arith.constant 2 : index
    %32 = vector.load %arg8[%c0_26, %c2] : memref<2x290xf32, #tpu.memory_space<vmem>>, vector<2x256xf32>
    %33 = vector.broadcast %20 : vector<1x256xf32> to vector<2x256xf32>
    %34 = arith.mulf %32, %33 : vector<2x256xf32>
    %c2_27 = arith.constant 2 : index
    %c0_28 = arith.constant 0 : index
    %c0_29 = arith.constant 0 : index
    %35 = vector.load %arg4[%c2_27, %c0_28, %c0_29] : memref<9x4x2xf32, #tpu.memory_space<vmem>>, vector<1x4x2xf32>
    %36 = vector.shape_cast %35 : vector<1x4x2xf32> to vector<4x2xf32>
    %cst_30 = arith.constant dense<0.000000e+00> : vector<4x256xf32>
    %37 = tpu.matmul %36, %34, %cst_30 {dimension_numbers = #tpu.dot_dimension_numbers<[1], [0], [0], [1], [0, 0, 1, 1], [], []>} : vector<4x2xf32>, vector<2x256xf32>, vector<4x256xf32> -> vector<4x256xf32>
    %38 = arith.addf %31, %37 : vector<4x256xf32>
    %c0_31 = arith.constant 0 : index
    %c16 = arith.constant 16 : index
    %39 = vector.load %arg8[%c0_31, %c16] : memref<2x290xf32, #tpu.memory_space<vmem>>, vector<2x256xf32>
    %40 = vector.broadcast %19 : vector<1x256xf32> to vector<2x256xf32>
    %41 = arith.mulf %39, %40 : vector<2x256xf32>
    %c3 = arith.constant 3 : index
    %c0_32 = arith.constant 0 : index
    %c0_33 = arith.constant 0 : index
    %42 = vector.load %arg4[%c3, %c0_32, %c0_33] : memref<9x4x2xf32, #tpu.memory_space<vmem>>, vector<1x4x2xf32>
    %43 = vector.shape_cast %42 : vector<1x4x2xf32> to vector<4x2xf32>
    %cst_34 = arith.constant dense<0.000000e+00> : vector<4x256xf32>
    %44 = tpu.matmul %43, %41, %cst_34 {dimension_numbers = #tpu.dot_dimension_numbers<[1], [0], [0], [1], [0, 0, 1, 1], [], []>} : vector<4x2xf32>, vector<2x256xf32>, vector<4x256xf32> -> vector<4x256xf32>
    %45 = arith.addf %38, %44 : vector<4x256xf32>
    %c0_35 = arith.constant 0 : index
    %c17_36 = arith.constant 17 : index
    %46 = vector.load %arg8[%c0_35, %c17_36] : memref<2x290xf32, #tpu.memory_space<vmem>>, vector<2x256xf32>
    %c4 = arith.constant 4 : index
    %c0_37 = arith.constant 0 : index
    %c0_38 = arith.constant 0 : index
    %47 = vector.load %arg4[%c4, %c0_37, %c0_38] : memref<9x4x2xf32, #tpu.memory_space<vmem>>, vector<1x4x2xf32>
    %48 = vector.shape_cast %47 : vector<1x4x2xf32> to vector<4x2xf32>
    %cst_39 = arith.constant dense<0.000000e+00> : vector<4x256xf32>
    %49 = tpu.matmul %48, %46, %cst_39 {dimension_numbers = #tpu.dot_dimension_numbers<[1], [0], [0], [1], [0, 0, 1, 1], [], []>} : vector<4x2xf32>, vector<2x256xf32>, vector<4x256xf32> -> vector<4x256xf32>
    %50 = arith.addf %45, %49 : vector<4x256xf32>
    %c0_40 = arith.constant 0 : index
    %c18 = arith.constant 18 : index
    %51 = vector.load %arg8[%c0_40, %c18] : memref<2x290xf32, #tpu.memory_space<vmem>>, vector<2x256xf32>
    %52 = vector.broadcast %20 : vector<1x256xf32> to vector<2x256xf32>
    %53 = arith.mulf %51, %52 : vector<2x256xf32>
    %c5 = arith.constant 5 : index
    %c0_41 = arith.constant 0 : index
    %c0_42 = arith.constant 0 : index
    %54 = vector.load %arg4[%c5, %c0_41, %c0_42] : memref<9x4x2xf32, #tpu.memory_space<vmem>>, vector<1x4x2xf32>
    %55 = vector.shape_cast %54 : vector<1x4x2xf32> to vector<4x2xf32>
    %cst_43 = arith.constant dense<0.000000e+00> : vector<4x256xf32>
    %56 = tpu.matmul %55, %53, %cst_43 {dimension_numbers = #tpu.dot_dimension_numbers<[1], [0], [0], [1], [0, 0, 1, 1], [], []>} : vector<4x2xf32>, vector<2x256xf32>, vector<4x256xf32> -> vector<4x256xf32>
    %57 = arith.addf %50, %56 : vector<4x256xf32>
    %c0_44 = arith.constant 0 : index
    %c32 = arith.constant 32 : index
    %58 = vector.load %arg8[%c0_44, %c32] : memref<2x290xf32, #tpu.memory_space<vmem>>, vector<2x256xf32>
    %59 = vector.broadcast %19 : vector<1x256xf32> to vector<2x256xf32>
    %60 = arith.mulf %58, %59 : vector<2x256xf32>
    %c6 = arith.constant 6 : index
    %c0_45 = arith.constant 0 : index
    %c0_46 = arith.constant 0 : index
    %61 = vector.load %arg4[%c6, %c0_45, %c0_46] : memref<9x4x2xf32, #tpu.memory_space<vmem>>, vector<1x4x2xf32>
    %62 = vector.shape_cast %61 : vector<1x4x2xf32> to vector<4x2xf32>
    %cst_47 = arith.constant dense<0.000000e+00> : vector<4x256xf32>
    %63 = tpu.matmul %62, %60, %cst_47 {dimension_numbers = #tpu.dot_dimension_numbers<[1], [0], [0], [1], [0, 0, 1, 1], [], []>} : vector<4x2xf32>, vector<2x256xf32>, vector<4x256xf32> -> vector<4x256xf32>
    %64 = arith.addf %57, %63 : vector<4x256xf32>
    %c0_48 = arith.constant 0 : index
    %c33 = arith.constant 33 : index
    %65 = vector.load %arg8[%c0_48, %c33] : memref<2x290xf32, #tpu.memory_space<vmem>>, vector<2x256xf32>
    %c7 = arith.constant 7 : index
    %c0_49 = arith.constant 0 : index
    %c0_50 = arith.constant 0 : index
    %66 = vector.load %arg4[%c7, %c0_49, %c0_50] : memref<9x4x2xf32, #tpu.memory_space<vmem>>, vector<1x4x2xf32>
    %67 = vector.shape_cast %66 : vector<1x4x2xf32> to vector<4x2xf32>
    %cst_51 = arith.constant dense<0.000000e+00> : vector<4x256xf32>
    %68 = tpu.matmul %67, %65, %cst_51 {dimension_numbers = #tpu.dot_dimension_numbers<[1], [0], [0], [1], [0, 0, 1, 1], [], []>} : vector<4x2xf32>, vector<2x256xf32>, vector<4x256xf32> -> vector<4x256xf32>
    %69 = arith.addf %64, %68 : vector<4x256xf32>
    %c0_52 = arith.constant 0 : index
    %c34 = arith.constant 34 : index
    %70 = vector.load %arg8[%c0_52, %c34] : memref<2x290xf32, #tpu.memory_space<vmem>>, vector<2x256xf32>
    %71 = vector.broadcast %20 : vector<1x256xf32> to vector<2x256xf32>
    %72 = arith.mulf %70, %71 : vector<2x256xf32>
    %c8 = arith.constant 8 : index
    %c0_53 = arith.constant 0 : index
    %c0_54 = arith.constant 0 : index
    %73 = vector.load %arg4[%c8, %c0_53, %c0_54] : memref<9x4x2xf32, #tpu.memory_space<vmem>>, vector<1x4x2xf32>
    %74 = vector.shape_cast %73 : vector<1x4x2xf32> to vector<4x2xf32>
    %cst_55 = arith.constant dense<0.000000e+00> : vector<4x256xf32>
    %75 = tpu.matmul %74, %72, %cst_55 {dimension_numbers = #tpu.dot_dimension_numbers<[1], [0], [0], [1], [0, 0, 1, 1], [], []>} : vector<4x2xf32>, vector<2x256xf32>, vector<4x256xf32> -> vector<4x256xf32>
    %76 = arith.addf %69, %75 : vector<4x256xf32>
    %c0_56 = arith.constant 0 : index
    %c0_57 = arith.constant 0 : index
    %77 = vector.load %arg5[%c0_56, %c0_57] : memref<4x1xf32, #tpu.memory_space<vmem>>, vector<4x1xf32>
    %78 = vector.broadcast %77 : vector<4x1xf32> to vector<4x256xf32>
    %79 = arith.addf %76, %78 : vector<4x256xf32>
    %80 = arith.negf %79 : vector<4x256xf32>
    %81 = math.exp %80 : vector<4x256xf32>
    %cst_58 = arith.constant 1.000000e+00 : f32
    %82 = vector.broadcast %cst_58 : f32 to vector<4x256xf32>
    %83 = arith.addf %82, %81 : vector<4x256xf32>
    %84 = arith.divf %82, %83 : vector<4x256xf32>
    %85 = arith.mulf %79, %84 : vector<4x256xf32>
    %86 = arith.addf %85, %1 : vector<4x256xf32>
    %c0_59 = arith.constant 0 : index
    %c0_60 = arith.constant 0 : index
    %c0_61 = arith.constant 0 : index
    %87 = vector.load %arg7[%c0_59, %c0_60, %c0_61] : memref<1x4x256xf32, #tpu.memory_space<vmem>>, vector<1x4x256xf32>
    %88 = vector.shape_cast %87 : vector<1x4x256xf32> to vector<4x256xf32>
    %89 = vector.shape_cast %86 : vector<4x256xf32> to vector<1x4x256xf32>
    tpu.vector_store %arg7[%c0_59, %c0_60, %c0_61], %89 {strides = array<i32>} : memref<1x4x256xf32, #tpu.memory_space<vmem>>, vector<1x4x256xf32>,
    return
  }
  func.func @transform_0(%arg0: i32) -> (i32, i32, i32) {
    %c0_i32 = arith.constant 0 : i32
    %c0_i32_0 = arith.constant 0 : i32
    %c0_i32_1 = arith.constant 0 : i32
    return %arg0, %c0_i32, %c0_i32_0 : i32, i32, i32
  }
  func.func @transform_1(%arg0: i32) -> (i32, i32) {
    %c0_i32 = arith.constant 0 : i32
    %c0_i32_0 = arith.constant 0 : i32
    %c0_i32_1 = arith.constant 0 : i32
    return %c0_i32, %c0_i32_0 : i32, i32
  }
  func.func @transform_2(%arg0: i32) -> (i32, i32) {
    %c0_i32 = arith.constant 0 : i32
    %c0_i32_0 = arith.constant 0 : i32
    %c0_i32_1 = arith.constant 0 : i32
    return %c0_i32, %c0_i32_0 : i32, i32
  }
  func.func @transform_3(%arg0: i32) -> (i32, i32, i32) {
    %c0_i32 = arith.constant 0 : i32
    %c0_i32_0 = arith.constant 0 : i32
    %c0_i32_1 = arith.constant 0 : i32
    %c0_i32_2 = arith.constant 0 : i32
    return %c0_i32, %c0_i32_0, %c0_i32_1 : i32, i32, i32
  }
  func.func @transform_4(%arg0: i32) -> (i32, i32) {
    %c0_i32 = arith.constant 0 : i32
    %c0_i32_0 = arith.constant 0 : i32
    %c0_i32_1 = arith.constant 0 : i32
    return %c0_i32, %c0_i32_0 : i32, i32
  }
  func.func @transform_5(%arg0: i32) -> (i32, i32) {
    %c0_i32 = arith.constant 0 : i32
    %c0_i32_0 = arith.constant 0 : i32
    %c0_i32_1 = arith.constant 0 : i32
    return %c0_i32, %c0_i32_0 : i32, i32
  }
  func.func @transform_6(%arg0: i32) -> (i32, i32, i32) {
    %c0_i32 = arith.constant 0 : i32
    %c0_i32_0 = arith.constant 0 : i32
    %c0_i32_1 = arith.constant 0 : i32
    return %arg0, %c0_i32, %c0_i32_0 : i32, i32, i32
  }
}

</mosaic_0001>

<bundles_post_ra>
// kernel: tpu_custom_call.1
= control target key start
LH: loop header
LB: loop body
LE: loop exit
PB: predicated region body
PF: predicated region fallthrough
CT: control target
= control target key end

     0   :  { %11 = vsyncpa [#allocation4], 0  ;;  %s2006_s0 = inlined_call_operand.vmem [shape: f32[2,4,256], index: 0, kind: input, shape index: {}]   ;;  %s2007_s1 = inlined_call_operand.vmem [shape: f32[2,4], index: 1, kind: input, shape index: {}]   ;;  %s2008_s2 = inlined_call_operand.vmem [shape: f32[2,1], index: 2, kind: input, shape index: {}]   ;;  %s2009_s3 = inlined_call_operand.vmem [shape: f32[9,4,2], index: 3, kind: input, shape index: {}]   ;;  %s2010_s4 = inlined_call_operand.vmem [shape: f32[4,1], index: 4, kind: input, shape index: {}]   ;;  %s2011_s5 = inlined_call_operand.vmem [shape: f32[2,256], index: 5, kind: input, shape index: {}]   ;;  %s2012_s6 = inlined_call_operand.hbm [shape: f32[2,4,256], index: 6, kind: output, shape index: {}]  }
   0x1   :  { %13 = vsyncpa [#allocation4 + $0x1], 0  ;;  %s1788_s21 = smov 0   ;;  %s1790_s22 = smov 0  }
   0x2   :  { %s1792_s23 = smov 0   ;;  %s1794_s24 = smov 0  }
   0x3 LB: > { %s1809_s25 = sadd.s32 4294967295, %s1733_s24   ;;  %s1539_s26 = sadd.s32 4294967294, %s1733_s24   ;;  %s1733_s24 = sphi %s1794_s24, %s2018_s24   ;;  %s1729_s23 = sphi %s1792_s23, %s2017_s23   ;;  %s1725_s22 = sphi %s1790_s22, %s2016_s22   ;;  %s1721_s21 = sphi %s1788_s21, %s2015_s21  }
   0x4   : > { %s1813_s27 = sadd.s32 1, %s1733_s24   ;;  %s157_s28 = sadd.s32 1, %s1729_s23 }
   0x5   : > { %s154_s29 = ssub.s32 %s1733_s24, %s1813_s27  ;;  %p167_p0 = scmp.ne.s32.totalorder %s1729_s23, %s1725_s22 }
   0x6   : > { %p155_p1 = scmp.eq.s32.totalorder %s154_s29, 0  ;;  %p168_p2 = scmp.eq.s32.totalorder %s1809_s25, 1 }
   0x7   : > { %p173_p3 = scmp.ne.s32.totalorder %s1725_s22, %s1721_s21  ;;  %p174_p4 = scmp.eq.s32.totalorder %s1539_s26, 1 }
   0x8   : > { %s1824_s30 = scalar_select %p155_p1, %s1729_s23, %s157_s28  }
   0x9   : > { %p1826_p5 = por %p168_p2, %p167_p0  ;;  %p1830_p6 = por %p174_p4, %p173_p3 }
   0xa   : > { %p1542_p7 = scmp.ge.s32.totalorder %s1733_s24, 1  ;;  %p215_p8 = scmp.lt.s32.totalorder %s1733_s24, 3 }
   0xc   : > { %p216_p9 = pnand %p1542_p7, %p215_p8 }
   0xd   : > { %p245_p10 = scmp.lt.s32.totalorder (!%p216_p9), %s1809_s25, 1  ;;  %s1738_s20 = smov (!%p216_p9), 2  }
   0xe   : > { %219 = sbr.rel (%p216_p9) target bundleno = 804 (0x324), region = 44  ;;  %s1739_s26 = smov (!%p216_p9), 16  }
   0xf   : > { %s1740_s28 = smov (!%p216_p9), 32   ;;  %s1741_s29 = smov (!%p216_p9), 17  }
  0x10   : > { %s1742_s9 = smov (!%p216_p9), 18   ;;  %s1743_s10 = smov (!%p216_p9), 34  }
  0x11   : > { %s1746_s13 = smov (!%p216_p9), 95   ;;  %s1747_s14 = smov (!%p216_p9), 126  }
  0x12   : > { %s1749_s16 = smov (!%p216_p9), 96   ;;  %s1750_s19 = smov (!%p216_p9), 110  }
  0x13   : > { %v1735_v0 = vmov 0.0   ;;  %v252_v1 = vld [vmem:[%s2008_s2] sm:$0x3]  ;;  %s246_s11 = scalar_select %p245_p10, %s1809_s25, 1  ;;  %v1736_v2 = vmov 0   ;;  %vm264_vm0 = vcmask 1043456   ;;  %v364_v6 = vlaneseq }
  0x14   : > { %333 = vmatprep.mubr.f32.mxu0 %v1735_v0  ;;  %516 = vmatprep.mubr.f32.mxu1 %v1735_v0  ;;  %v251_v5 = vld [vmem:[%s2007_s1] sm:$0x3]  ;;  %vm260_vm1 = vcmask 31744   ;;  %v1737_v11 = vmov 1983009808   ;;  %vm354_vm2 = vcmask 132096  }
  0x15   : > { %1651 = vset.pattern.permute.xlu0 %v1736_v2  ;;  %1652 = vset.pattern.permute.xlu1 %v1736_v2  ;;  %s1593_s12 = sshll.u32 %s246_s11, 3  ;;  %v365_v7 = vshrl.u32 %v364_v6, 7  ;;  %v380_v10 = vld [vmem:[%s2011_s5] sm:$0xf]  ;;  %v362_v12 = vunpack.c.l.s4 %v1737_v11  ;;  %vm356_vm3 = vcmask 271496   ;;  %vm374_vm4 = vcmask 1041544  }
  0x16   : > { %255 = vperm.xlu0 %1651, %v252_v1   ;;  %s249_s15 = scalar_lea.vmem %s2006_s0, %s1593_s12  ;;  %355 = vst.msk [vmem:[#allocation2] sm:$0x3] %vm354_vm2, %v1735_v0  ;;  %vm375_vm5 = vcmask 1043458   ;;  %vm377_vm7 = vcmask 136196   ;;  %vm371_vm8 = vcmask 138240   ;;  %vm443_vm10 = vcmask 15360  }
  0x17   : > { %v1846_v3 = vld [vmem:[%s249_s15] sm:$0xff]  ;;  %v613_v8 = vsub.s32 1, %v365_v7  ;;  %v617_v9 = vsub.s32 3, %v365_v7  ;;  %v363_v15 = vunpack.c.0.s8 %v362_v12  ;;  %v385_v18 = vsub.s32 0, %v365_v7  ;;  %357 = vst.msk [vmem:[#allocation2 + $0x4] sm:$0x3] %vm356_vm3, %v1735_v0  ;;  %vm376_vm6 = vmor %vm375_vm5, %vm374_vm4 }
  0x18   : > { %v1850_v4 = vcombine.high %v1846_v3, %v1846_v3  ;;  %v389_v19 = vsub.s32 2, %v365_v7  ;;  %vm378_vm9 = vmor %vm377_vm7, %vm376_vm6  ;;  %vm757_vm11 = vcmask 130048   ;;  %s1744_s11 = smov 111   ;;  %s1745_s12 = smov 127   ;;  %vm447_vm12 = vcmask 1041408  }
  0x19   : > { %v614_v13 = vrot.slane %v380_v10, %v613_v8  ;;  %v618_v14 = vrot.slane %v380_v10, %v617_v9  ;;  %v1861_v20 = vsub.s32 %v363_v15, %v365_v7  ;;  %v386_v22 = vrot.slane %v380_v10, %v385_v18  ;;  %s1748_s15 = smov 112  }
  0x1a   : > { %1546 = vmatprep.subr.msk.mxu0 %vm264_vm0, %v1850_v4  ;;  %v390_v23 = vrot.slane %v380_v10, %v389_v19  ;;  %vm1098_vm13 = vcmask 261120   ;;  %vm982_vm14 = vcmask 146432   ;;  %vm1323_vm15 = vcmask 277504  }
  0x1b   : > { %1547 = vmatpush1.msk.msra.mxu0 %vm264_vm0, %v1846_v3  ;;  %v624_v16 = vrot.slane %v614_v13, %v613_v8  ;;  %v628_v17 = vrot.slane %v618_v14, %v613_v8  ;;  %v396_v25 = vrot.slane %v386_v22, %v385_v18  ;;  %vm440_vm0 = vcmask 1039360  }
  0x1c   : > { %1548 = vmatmul.mubr.msk.f32.vlgmr.msra.gmra.mxu0 %vm260_vm1, %v251_v5  ;;  %v400_v26 = vrot.slane %v390_v23, %v385_v18  ;;  %vm670_vm1 = vcmask 1031168   ;;  %vm895_vm2 = vcmask 908288   ;;  %vm786_vm3 = vcmask 916480  }
  0x1d   : > { %603 = vmatprep.mubr.f32.mxu0 %v1735_v0  ;;  %v631_v21 = vcombine.low %v624_v16, %v628_v17  ;;  %vm1011_vm4 = vcmask 900096   ;;  %vm1236_vm5 = vcmask 777216   ;;  %vm1127_vm6 = vcmask 785408  }
  0x1e   : > { %v403_v27 = vcombine.low %v396_v25, %v400_v26  ;;  %vm1352_vm7 = vcmask 769024  }
  0x1f   : > { %v638_v24 = vrot.slane %v631_v21, %v1861_v20 }
  0x20   : > { %v1865_v28 = vrot.slane %v403_v27, %v1861_v20 }
  0x21   : > { %639 = vrot.lane.b32.xlu1 %v638_v24, %s1738_s20  ;;  %s1751_s20 = smov 94  }
  0x25   : > { %754 = vrot.lane.b32.xlu1 %v1865_v28, %s1739_s26 }
  0x29   : > { %1095 = vrot.lane.b32.xlu1 %v1865_v28, %s1740_s28 }
  0x91   : > { %v256_v29 = vpop.permute.xlu0 %255 }
  0x93   : > { %v640_v49 = vpop.permute.xlu1 %639 }
  0x94   : > { %v641_v51 = vrot.slane %v640_v49, 6 }
  0x96   : > { %v642_v60 = vsel %vm443_vm10, %v641_v51, %v640_v49 }
  0x97   : > { %v755_v50 = vpop.permute.xlu1 %754 }
  0x98   : > { %v756_v58 = vrot.slane %v755_v50, 6 }
  0x9a   : > { %v758_v6 = vsel %vm757_vm11, %v756_v58, %v755_v50 }
  0x9b   : > { %v1096_v62 = vpop.permute.xlu1 %1095 }
  0x9c   : > { %v1097_v9 = vrot.slane %v1096_v62, 6 }
  0x9e   : > { %v1099_v17 = vsel %vm1098_vm13, %v1097_v9, %v1096_v62 }
  0xdc   : > { %v335_v30 = vpop.f32.mrf.mxu0 }
  0xdd   : > { %v336_v31 = vadd.f32 %v335_v30, %v256_v29 }
  0xde   : > { %v337_v32 = vpop.f32.mrf.mxu0 }
  0xdf   : > { %v1549_v33 = vmul.f32 -1.442695, %v336_v31  ;;  %v338_v34 = vadd.f32 %v337_v32, %v256_v29 }
  0xe1   : > { %1657 = vpow2.f32 %v1549_v33  ;;  %v1550_v35 = vmul.f32 -1.442695, %v338_v34 }
  0xe3   : > { %1659 = vpow2.f32 %v1550_v35 }
  0xee   : > { %v1658_v36 = vpop.eup %1657 }
  0xef   : > { %v346_v37 = vadd.f32 1.0, %v1658_v36 }
  0xf0   : > { %v1660_v38 = vpop.eup %1659 }
  0xf1   : > { %1661 = vrcp.f32 %v346_v37  ;;  %v347_v39 = vadd.f32 1.0, %v1660_v38 }
  0xf3   : > { %1663 = vrcp.f32 %v347_v39 }
  0xfe   : > { %v1662_v40 = vpop.eup %1661 }
  0xff   : > { %v352_v42 = vmul.f32 %v1662_v40, %v336_v31  ;;  %v413_v31 = vld [vmem:[%s2009_s3] sm:$0xf] }
 0x100   : > { %v1664_v41 = vpop.eup %1663 }
 0x101   : > { %v353_v43 = vmul.f32 %v1664_v41, %v338_v34 }
 0x103   : > { %v360_v44 = vcombine.low %v352_v42, %v353_v43 }
 0x105   : > { %v367_v45 = vrot.slane %v360_v44, %v1861_v20 }
 0x107   : > { %368 = vrot.lane.b32.xlu0 %v367_v45, %s1741_s29 }
 0x10b   : > { %979 = vrot.lane.b32.xlu0 %v638_v24, %s1742_s9  ;;  %s242_s9 = sand.u32 1, %s1725_s22  }
 0x10c   : > { %s1466_s17 = scalar_lea.sflag [#allocation4], %s242_s9 }
 0x10f   : > { %1320 = vrot.lane.b32.xlu0 %v638_v24, %s1743_s10  ;;  %s1543_s10 = sshll.u32 %s242_s9, 3 }
 0x179   : > { %v369_v46 = vpop.permute.xlu0 %368 }
 0x17a   : > { %v370_v47 = vrot.slane %v369_v46, 6 }
 0x17c   : > { %v372_v48 = vsel %vm371_vm8, %v370_v47, %v369_v46 }
 0x17d   : > { %379 = vst.msk [vmem:[#allocation2] sm:$0x3f] %vm378_vm9, %v372_v48  ;;  %v980_v12 = vpop.permute.xlu0 %979 }
 0x17e   : > { %v981_v14 = vrot.slane %v980_v12, 6 }
 0x180   : > { %v983_v22 = vsel %vm982_vm14, %v981_v14, %v980_v12 }
 0x181   : > { %v1321_v32 = vpop.permute.xlu0 %1320 }
 0x182   : > { %v1322_v37 = vrot.slane %v1321_v32, 6 }
 0x184   : > { %v869_v52 = vld [vmem:[#allocation2] sm:$0x3f]  ;;  %v1324_v42 = vsel %vm1323_vm15, %v1322_v37, %v1321_v32 }
 0x185   : > { %v414_v53 = vld [vmem:[#allocation2] sm:$0x3f]  ;;  %v880_v54 = vrot.slane %v869_v52, %v1861_v20  ;;  %v873_v19 = vcombine.high %v869_v52, %v869_v52 }
 0x186   : > { %v425_v55 = vrot.slane %v414_v53, %v1861_v20  ;;  %v418_v56 = vcombine.high %v414_v53, %v414_v53  ;;  %v381_v57 = vld [vmem:[#allocation2] sm:$0xf] }
 0x187   : > { %v1210_v59 = vld [vmem:[#allocation2] sm:$0x3f]  ;;  %889 = vrot.lane.b32.xlu0 %v880_v54, %s1744_s11  ;;  %v412_v63 = vmul.f32 %v1865_v28, %v381_v57  ;;  %v888_v24 = vcombine.high %v880_v54, %v880_v54  ;;  %v887_v26 = vrot.slane %v873_v19, %v1861_v20 }
 0x188   : > { %434 = vrot.lane.b32.xlu1 %v425_v55, %s1745_s12  ;;  %v610_v61 = vld [vmem:[#allocation2] sm:$0x3f]  ;;  %v1221_v1 = vrot.slane %v1210_v59, %v1861_v20  ;;  %v432_v2 = vrot.slane %v418_v56, %v1861_v20  ;;  %v433_v13 = vcombine.high %v425_v55, %v425_v55  ;;  %v1214_v28 = vcombine.high %v1210_v59, %v1210_v59 }
 0x189   : > { %v753_v5 = vld [vmem:[#allocation2] sm:$0x3f]  ;;  %v530_v7 = vrot.slane %v412_v63, %v1861_v20  ;;  %v644_v8 = vmul.f32 %v642_v60, %v610_v61 }
 0x18a   : > { %v760_v11 = vmul.f32 %v758_v6, %v753_v5  ;;  %v1094_v16 = vld [vmem:[#allocation2] sm:$0x3f]  ;;  %v1228_v30 = vrot.slane %v1214_v28, %v1861_v20  ;;  %v1229_v33 = vcombine.high %v1221_v1, %v1221_v1  ;;  %v1570_v28 = vld [vmem:[%s2009_s3 + $0x14] sm:$0xf] }
 0x18b   : > { %438 = vrot.lane.b32.xlu0 %v432_v2, %s1745_s12  ;;  %v531_v10 = vcombine.high %v530_v7, %v530_v7  ;;  %v655_v15 = vrot.slane %v644_v8, %v1861_v20  ;;  %v978_v21 = vld [vmem:[#allocation2] sm:$0x3f]  ;;  %v1101_v23 = vmul.f32 %v1099_v17, %v1094_v16  ;;  %v648_v34 = vcombine.high %v644_v8, %v644_v8 }
 0x18c   : > { %1230 = vrot.lane.b32.xlu1 %v1221_v1, %s1746_s13  ;;  %v771_v18 = vrot.slane %v760_v11, %v1861_v20  ;;  %v985_v25 = vmul.f32 %v983_v22, %v978_v21  ;;  %v764_v35 = vcombine.high %v760_v11, %v760_v11  ;;  %v1319_v41 = vld [vmem:[#allocation2] sm:$0x3f]  ;;  %v1562_v22 = vld [vmem:[%s2009_s3 + $0xc] sm:$0xf] }
 0x18d   : > { %1555 = vmatprep.subr.msk.mxu0 %vm447_vm12, %v531_v10  ;;  %v1112_v27 = vrot.slane %v1101_v23, %v1861_v20  ;;  %v663_v36 = vcombine.high %v655_v15, %v655_v15  ;;  %v662_v38 = vrot.slane %v648_v34, %v1861_v20  ;;  %v1326_v44 = vmul.f32 %v1324_v42, %v1319_v41  ;;  %v1435_v54 = vld [vmem:[%s2010_s4] sm:$0xf]  ;;  %v1574_v34 = vld [vmem:[%s2009_s3 + $0x18] sm:$0xf] }
 0x18e   : > { %1556 = vmatpush1.msk.msra.mxu0 %vm447_vm12, %v530_v7  ;;  %v996_v29 = vrot.slane %v985_v25, %v1861_v20  ;;  %v989_v39 = vcombine.high %v985_v25, %v985_v25  ;;  %v778_v40 = vrot.slane %v764_v35, %v1861_v20  ;;  %v779_v43 = vcombine.high %v771_v18, %v771_v18  ;;  %v1578_v35 = vld [vmem:[%s2009_s3 + $0x1c] sm:$0xf] }
 0x18f   : > { %664 = vrot.lane.b32.xlu0 %v655_v15, %s1747_s14  ;;  %1557 = vmatmul.mubr.msk.f32.vlgmr.msra.gmra.mxu0 %vm443_vm10, %v413_v31  ;;  %v1105_v46 = vcombine.high %v1101_v23, %v1101_v23  ;;  %v1337_v48 = vrot.slane %v1326_v44, %v1861_v20  ;;  %v1120_v49 = vcombine.high %v1112_v27, %v1112_v27  ;;  %v1566_v23 = vld [vmem:[%s2009_s3 + $0x10] sm:$0xf] }
 0x190   : > { %436 = vrot.lane.b32.xlu1 %v433_v13, %s1745_s12  ;;  %860 = vmatprep.mubr.f32.mxu0 %v1735_v0  ;;  %v1003_v45 = vrot.slane %v989_v39, %v1861_v20  ;;  %v1004_v47 = vcombine.high %v996_v29, %v996_v29  ;;  %v1330_v50 = vcombine.high %v1326_v44, %v1326_v44  ;;  %v1558_v13 = vld [vmem:[%s2009_s3 + $0x8] sm:$0xf]  ;;  %s244_s12 = scalar_lea.vmem [#allocation3], %s1543_s10 }
 0x191   : > { %v1119_v51 = vrot.slane %v1105_v46, %v1861_v20  ;;  %v1345_v52 = vcombine.high %v1337_v48, %v1337_v48 }
 0x192   : > { %v1344_v53 = vrot.slane %v1330_v50, %v1861_v20  ;;  %v1551_v20 = vld [vmem:[%s2009_s3 + $0x4] sm:$0xf] }
 0x193   : > { %891 = vrot.lane.b32.xlu0 %v888_v24, %s1744_s11 }
 0x194   : > { %780 = vrot.lane.b32.xlu1 %v771_v18, %s1748_s15 }
 0x197   : > { %1121 = vrot.lane.b32.xlu0 %v1112_v27, %s1749_s16 }
 0x198   : > { %893 = vrot.lane.b32.xlu1 %v887_v26, %s1744_s11  ;;  %s1594_s11 = sshll.u32 %s1809_s25, 7  ;;  %s1752_s25 = smov [#allocation3]  }
 0x19b   : > { %1234 = vrot.lane.b32.xlu0 %v1228_v30, %s1746_s13 }
 0x19c   : > { %1005 = vrot.lane.b32.xlu1 %v996_v29, %s1750_s19 }
 0x19f   : > { %666 = vrot.lane.b32.xlu0 %v663_v36, %s1747_s14 }
 0x1a0   : > { %1232 = vrot.lane.b32.xlu1 %v1229_v33, %s1746_s13  ;;  %s1480_s13 = sshll.u32 %s244_s12, 4  ;;  %s1481_s13 = int_to_ptr.vmem [resolvable:$true] %s1480_s13 }
 0x1a1   : > { %s1673_s18 = scalar_lea.vmem %s1481_s13, 128 }
 0x1a2   : > { %p1674_p11 = scmp.ne.s32.totalorder %s1481_s13, %s1673_s18 }
 0x1a3   : > { %784 = vrot.lane.b32.xlu0 %v778_v40, %s1748_s15  ;;  %v1582_v40 = vld [vmem:[%s2009_s3 + $0x20] sm:$0xf] }
 0x1a4   : > { %668 = vrot.lane.b32.xlu1 %v662_v38, %s1747_s14  ;;  %p1675_p12 = pnand %p1674_p11, %p1826_p5 }
 0x1a6   : > { %p1676_p13 = pneg %p1675_p12 }
 0x1a7   : > { %1009 = vrot.lane.b32.xlu0 %v1003_v45, %s1750_s19 }
 0x1a8   : > { %782 = vrot.lane.b32.xlu1 %v779_v43, %s1748_s15 }
 0x1ab   : > { %1123 = vrot.lane.b32.xlu0 %v1120_v49, %s1749_s16 }
 0x1ac   : > { %1007 = vrot.lane.b32.xlu1 %v1004_v47, %s1750_s19  ;;  %s1677_s19 = sshll.u32 %s1752_s25, 4  ;;  %s1678_s19 = int_to_ptr.vmem [resolvable:$false] %s1677_s19 }
 0x1ad   : > { %p1680_p0 = scmp.lt.s32.totalorder %s1481_s13, %s1678_s19 }
 0x1af   : > { %1348 = vrot.lane.b32.xlu0 %v1345_v52, %s1751_s20 }
 0x1b0   : > { %1125 = vrot.lane.b32.xlu1 %v1119_v51, %s1749_s16  ;;  %s1478_s16 = scalar_lea.hbm %s2012_s6, %s1594_s11 }
 0x1b3   : > { %1346 = vrot.lane.b32.xlu0 %v1337_v48, %s1751_s20 }
 0x1b4   : > { %1350 = vrot.lane.b32.xlu1 %v1344_v53, %s1751_s20  ;;  %s1679_s20 = scalar_lea.vmem %s1678_s19, 256 }
 0x1b5   : > { %p1681_p1 = scmp.lt.s32.totalorder %s1679_s20, %s1673_s18 }
 0x1b7   : > { %p1682_p2 = por %p1681_p1, %p1680_p0 }
 0x1b8   : > { %1438 = vperm.xlu1 %1652, %v1435_v54  }
 0x1b9   : > { %p1683_p3 = pnand %p1682_p2, %p1676_p13 }
 0x1f9   : > { %v890_v56 = vpop.permute.xlu0 %889 }
 0x1fa   : > { %v435_v55 = vpop.permute.xlu1 %434 }
 0x1fd   : > { %v439_v58 = vpop.permute.xlu0 %438 }
 0x1fe   : > { %v1231_v57 = vpop.permute.xlu1 %1230 }
 0x201   : > { %v665_v60 = vpop.permute.xlu0 %664 }
 0x202   : > { %v437_v59 = vpop.permute.xlu1 %436 }
 0x203   : > { %v442_v61 = vsel %vm440_vm0, %v437_v59, %v439_v58  ;;  %v441_v62 = vsel %vm440_vm0, %v435_v55, %v437_v59 }
 0x204   : > { %1552 = vmatprep.subr.msk.mxu1 %vm447_vm12, %v442_v61 }
 0x205   : > { %1553 = vmatpush1.msk.msra.mxu1 %vm447_vm12, %v441_v62  ;;  %v892_v1 = vpop.permute.xlu0 %891 }
 0x206   : > { %v781_v63 = vpop.permute.xlu1 %780  ;;  %1554 = vmatmul.mubr.msk.f32.vlgmr.msra.gmra.mxu1 %vm443_vm10, %v1551_v20  ;;  %v896_v16 = vsel %vm895_vm2, %v890_v56, %v892_v1 }
 0x207   : > { %744 = vmatprep.mubr.f32.mxu1 %v1735_v0 }
 0x209   : > { %v1122_v5 = vpop.permute.xlu0 %1121 }
 0x20a   : > { %v894_v2 = vpop.permute.xlu1 %893 }
 0x20b   : > { %v897_v15 = vsel %vm895_vm2, %v892_v1, %v894_v2 }
 0x20d   : > { %v1235_v7 = vpop.permute.xlu0 %1234 }
 0x20e   : > { %v1006_v6 = vpop.permute.xlu1 %1005 }
 0x211   : > { %v667_v9 = vpop.permute.xlu0 %666 }
 0x212   : > { %v1233_v8 = vpop.permute.xlu1 %1232  ;;  %v671_v14 = vsel %vm670_vm1, %v665_v60, %v667_v9 }
 0x213   : > { %v1238_v29 = vsel %vm1236_vm5, %v1233_v8, %v1235_v7  ;;  %v1237_v30 = vsel %vm1236_vm5, %v1231_v57, %v1233_v8 }
 0x215   : > { %v785_v12 = vpop.permute.xlu0 %784 }
 0x216   : > { %v669_v10 = vpop.permute.xlu1 %668 }
 0x217   : > { %v672_v11 = vsel %vm670_vm1, %v667_v9, %v669_v10 }
 0x218   : > { %1559 = vmatprep.subr.msk.mxu1 %vm447_vm12, %v672_v11 }
 0x219   : > { %1560 = vmatpush1.msk.msra.mxu1 %vm447_vm12, %v671_v14  ;;  %v1010_v21 = vpop.permute.xlu0 %1009 }
 0x21a   : > { %v783_v17 = vpop.permute.xlu1 %782  ;;  %1567 = vmatprep.subr.msk.mxu1 %vm447_vm12, %v897_v15  ;;  %1561 = vmatmul.mubr.msk.f32.vlgmr.msra.gmra.mxu1 %vm443_vm10, %v1558_v13 }
 0x21b   : > { %v787_v18 = vsel %vm786_vm3, %v781_v63, %v783_v17  ;;  %v788_v19 = vsel %vm786_vm3, %v783_v17, %v785_v12  ;;  %1568 = vmatpush1.msk.msra.mxu1 %vm447_vm12, %v896_v16  ;;  %969 = vmatprep.mubr.f32.mxu1 %v1735_v0 }
 0x21c   : > { %1563 = vmatprep.subr.msk.mxu0 %vm447_vm12, %v788_v19 }
 0x21d   : > { %1564 = vmatpush1.msk.msra.mxu0 %vm447_vm12, %v787_v18  ;;  %v1124_v27 = vpop.permute.xlu0 %1123 }
 0x21e   : > { %v1008_v24 = vpop.permute.xlu1 %1007  ;;  %1565 = vmatmul.mubr.msk.f32.vlgmr.msra.gmra.mxu0 %vm443_vm10, %v1562_v22  ;;  %1569 = vmatmul.mubr.msk.f32.vlgmr.msra.gmra.mxu1 %vm443_vm10, %v1566_v23  ;;  %v1128_v36 = vsel %vm1127_vm6, %v1122_v5, %v1124_v27 }
 0x21f   : > { %v1012_v25 = vsel %vm1011_vm4, %v1006_v6, %v1008_v24  ;;  %v1013_v26 = vsel %vm1011_vm4, %v1008_v24, %v1010_v21  ;;  %1085 = vmatprep.mubr.f32.mxu0 %v1735_v0  ;;  %1201 = vmatprep.mubr.f32.mxu1 %v1735_v0 }
 0x220   : > { %1571 = vmatprep.subr.msk.mxu0 %vm447_vm12, %v1013_v26 }
 0x221   : > { %1572 = vmatpush1.msk.msra.mxu0 %vm447_vm12, %v1012_v25  ;;  %v1349_v33 = vpop.permute.xlu0 %1348 }
 0x222   : > { %v1126_v31 = vpop.permute.xlu1 %1125  ;;  %1579 = vmatprep.subr.msk.mxu0 %vm447_vm12, %v1238_v29  ;;  %1573 = vmatmul.mubr.msk.f32.vlgmr.msra.gmra.mxu0 %vm443_vm10, %v1570_v28 }
 0x223   : > { %v1129_v32 = vsel %vm1127_vm6, %v1124_v27, %v1126_v31  ;;  %1580 = vmatpush1.msk.msra.mxu0 %vm447_vm12, %v1237_v30  ;;  %1310 = vmatprep.mubr.f32.mxu0 %v1735_v0 }
 0x224   : > { %1575 = vmatprep.subr.msk.mxu1 %vm447_vm12, %v1129_v32 }
 0x225   : > { %1576 = vmatpush1.msk.msra.mxu1 %vm447_vm12, %v1128_v36  ;;  %v1347_v39 = vpop.permute.xlu0 %1346 }
 0x226   : > { %v1351_v37 = vpop.permute.xlu1 %1350  ;;  %1577 = vmatmul.mubr.msk.f32.vlgmr.msra.gmra.mxu1 %vm443_vm10, %v1574_v34  ;;  %1581 = vmatmul.mubr.msk.f32.vlgmr.msra.gmra.mxu0 %vm443_vm10, %v1578_v35  ;;  %v1353_v41 = vsel %vm1352_vm7, %v1347_v39, %v1349_v33 }
 0x227   : > { %v1354_v38 = vsel %vm1352_vm7, %v1349_v33, %v1351_v37  ;;  %1426 = vmatprep.mubr.f32.mxu1 %v1735_v0 }
 0x228   : > { %1583 = vmatprep.subr.msk.mxu1 %vm447_vm12, %v1354_v38 }
 0x229   : > { %1584 = vmatpush1.msk.msra.mxu1 %vm447_vm12, %v1353_v41 }
 0x22a   : > { %1585 = vmatmul.mubr.msk.f32.vlgmr.msra.gmra.mxu1 %vm443_vm10, %v1582_v40 }
 0x233   : > { %v1439_v7 = vpop.permute.xlu1 %1438 }
 0x24f   : > { %v605_v43 = vpop.f32.mrf.mxu0 }
 0x251   : > { %v607_v46 = vpop.f32.mrf.mxu0 }
 0x2c6   : > { %v518_v42 = vpop.f32.mrf.mxu1 }
 0x2c7   : > { %v606_v45 = vadd.f32 %v605_v43, %v518_v42 }
 0x2c8   : > { %v520_v44 = vpop.f32.mrf.mxu1 }
 0x2c9   : > { %v608_v48 = vadd.f32 %v607_v46, %v520_v44 }
 0x2da   : > { %v746_v47 = vpop.f32.mrf.mxu1 }
 0x2db   : > { %v751_v49 = vadd.f32 %v746_v47, %v606_v45 }
 0x2dc   : > { %v748_v0 = vpop.f32.mrf.mxu1 }
 0x2dd   : > { %v752_v52 = vadd.f32 %v748_v0, %v608_v48 }
 0x2de   : > { %v862_v50 = vpop.f32.mrf.mxu0  ;;  %v971_v51 = vpop.f32.mrf.mxu1 }
 0x2df   : > { %v867_v53 = vadd.f32 %v862_v50, %v751_v49 }
 0x2e0   : > { %v864_v54 = vpop.f32.mrf.mxu0  ;;  %v973_v55 = vpop.f32.mrf.mxu1 }
 0x2e1   : > { %v868_v56 = vadd.f32 %v864_v54, %v752_v52  ;;  %v976_v57 = vadd.f32 %v971_v51, %v867_v53 }
 0x2e2   : > { %v1087_v58 = vpop.f32.mrf.mxu0 }
 0x2e3   : > { %v977_v59 = vadd.f32 %v973_v55, %v868_v56  ;;  %v1092_v61 = vadd.f32 %v1087_v58, %v976_v57 }
 0x2e4   : > { %v1089_v60 = vpop.f32.mrf.mxu0 }
 0x2e5   : > { %v1093_v63 = vadd.f32 %v1089_v60, %v977_v59 }
 0x2e6   : > { %v1203_v62 = vpop.f32.mrf.mxu1  ;;  %v1312_v20 = vpop.f32.mrf.mxu0 }
 0x2e7   : > { %v1208_v1 = vadd.f32 %v1203_v62, %v1092_v61 }
 0x2e8   : > { %v1205_v2 = vpop.f32.mrf.mxu1  ;;  %v1314_v8 = vpop.f32.mrf.mxu0 }
 0x2e9   : > { %v1209_v5 = vadd.f32 %v1205_v2, %v1093_v63  ;;  %v1317_v6 = vadd.f32 %v1312_v20, %v1208_v1 }
 0x2ea   : > { %v1428_v9 = vpop.f32.mrf.mxu1 }
 0x2eb   : > { %v1318_v10 = vadd.f32 %v1314_v8, %v1209_v5  ;;  %v1433_v11 = vadd.f32 %v1428_v9, %v1317_v6 }
 0x2ec   : > { %v1430_v12 = vpop.f32.mrf.mxu1 }
 0x2ed   : > { %v1441_v13 = vadd.f32 %v1439_v7, %v1433_v11  ;;  %v1434_v14 = vadd.f32 %v1430_v12, %v1318_v10 }
 0x2ef   : > { %v1586_v15 = vmul.f32 -1.442695, %v1441_v13  ;;  %v1442_v16 = vadd.f32 %v1439_v7, %v1434_v14 }
 0x2f1   : > { %1665 = vpow2.f32 %v1586_v15  ;;  %v1587_v17 = vmul.f32 -1.442695, %v1442_v16 }
 0x2f3   : > { %1667 = vpow2.f32 %v1587_v17 }
 0x2fe   : > { %v1666_v18 = vpop.eup %1665 }
 0x2ff   : > { %v1449_v19 = vadd.f32 1.0, %v1666_v18 }
 0x300   : > { %v1668_v21 = vpop.eup %1667 }
 0x301   : > { %1669 = vrcp.f32 %v1449_v19  ;;  %v1450_v22 = vadd.f32 1.0, %v1668_v21 }
 0x303   : > { %1671 = vrcp.f32 %v1450_v22 }
 0x30e   : > { %v1670_v23 = vpop.eup %1669 }
 0x30f   : > { %v1455_v24 = vmul.f32 %v1670_v23, %v1441_v13 }
 0x310   : > { %v1672_v25 = vpop.eup %1671 }
 0x311   : > { %v1456_v26 = vmul.f32 %v1672_v25, %v1442_v16  ;;  %v1458_v27 = vadd.f32 %v1455_v24, %v1846_v3 }
 0x313   : > { %v1459_v28 = vadd.f32 %v1456_v26, %v1850_v4 }
 0x315   : > { %v1462_v29 = vcombine.low %v1458_v27, %v1459_v28 }
 0x317   : > { %1464 = vst [vmem:[%s244_s12] sm:$0xff] %v1462_v29 }
 0x318   : > { %1686 = shalt.err (!%p1683_p3)
}
 0x319   : > { %s1687_s26 = scalar_lea.hbm %s1478_s16, 128  ;;  %s1691_s9 = scalar_lea.hbm %s2012_s6, 256 }
 0x31a   : > { %p1688_p4 = scmp.ne.s32.totalorder %s1478_s16, %s1687_s26  ;;  %p1692_p9 = scmp.lt.s32.totalorder %s1478_s16, %s2012_s6 }
 0x31b   : > { %p1693_p10 = scmp.lt.s32.totalorder %s1691_s9, %s1687_s26 }
 0x31c   : > { %p1689_p7 = pnand %p1688_p4, %p1826_p5 }
 0x31d   : > { %p1694_p11 = por %p1693_p10, %p1692_p9 }
 0x31e   : > { %p1690_p8 = pneg %p1689_p7 }
 0x320   : > { %p1695_p12 = pnand %p1694_p11, %p1690_p8 }
 0x322   : > { %1698 = shalt.err (!%p1695_p12)
}
 0x323   : > { %1595 = dma.vmem_to_hbm [thread:$0]  (%p1826_p5), %s1481_s13, 128, %s1478_s16, %s1466_s17  }
 0x324 PF: > { %p1601_p13 = scmp.ge.s32.totalorder %s1733_s24, 2  ;;  %s1492_s12 = sand.u32 1, %s1721_s21  }
 0x325   : > { %s1493_s14 = scalar_lea.sflag [#allocation4], %s1492_s12 }
 0x326   : > { %p1598_p0 = pnand %p1601_p13, %p1830_p6 }
 0x328   : > { %p1599_p1 = pneg %p1598_p0 }
 0x32a   : > { %1716 = dma.done.wait (%p1599_p1), %s1493_s14, 128  }
 0x32b   : > { %1718 = vsyncadd (%p1599_p1), %s1493_s14, 4294967168  ;;  %p16_p2 = scmp.ge.s32.totalorder %s1813_s27, 4   ;;  %s2015_s21 = smov %s1725_s22 }
 0x32c   : > { %s2016_s22 = smov %s1729_s23  ;;  %s2017_s23 = smov %s1824_s30 }
 0x32d   : > { %s2018_s24 = smov %s1813_s27  ;;  %18 = sbr.rel (!%p16_p2) target bundleno = 3 (0x3), region = 87 }
 0x332   :  { %1498 = vsyncpa [#allocation4], 1 }
 0x333   :  { %1500 = vsyncpa [#allocation4 + $0x1], 1 }

</bundles_post_ra>
